<compile_context>
chip_gen: v5e
topology: v5e:2x2
jax: 0.10.0
libtpu: 0.0.40
codegen_flags: <defaults>
</compile_context>

<pallas_src>
import math

import jax
import jax.numpy as jnp
from jax.experimental import pallas as pl
from jax.experimental.pallas import tpu as pltpu


def _softmax(s):
    m = jnp.max(s, axis=-1, keepdims=True)
    p = jnp.exp(s - m)
    inv = pl.reciprocal(jnp.sum(p, axis=-1, keepdims=True), approx=True)
    return p * inv


# ------------------------------- wrapper --------------------------------------

def transformer_decoder_net_forward(x, params, go_mask, n_decoder_concepts):
    B, D = x.shape
    S = go_mask.shape[0]
    T = n_decoder_concepts
    F = params["w1"].shape[1]

    # Slab lane width: holds 4 D-wide attention matrices side by side, the padded FFN
    # hidden dim, and every bias/LN vector. Rounded up to full 128-lane vregs.
    SW = max(4 * D, F, 128)
    SW = ((SW + 127) // 128) * 128
    assert D % 8 == 0, "x_dim must be a multiple of 8 for clean sublane row groups"

    # Packed-parameter slab row layout (all rows SW lanes wide, f32):
    #   [0     , D     ) : [Wq_s | Wk_s | Wv_s | Wo_s | 0-pad]        (self-attn)
    #   [D     , 2D    ) : [Wq_c | Wk_c | Wv_c | Wo_c | 0-pad]        (cross-attn)
    #   [2D    , 3D    ) : w1  zero-padded to (D, SW)                 (FFN in)
    #   [3D    , 3D+SW ) : w2  zero-padded to (SW, SW)                (FFN out, cols [0:D])
    #   [R_VEC , R_VEC+16): 12 vector rows + 4 zero rows:
    #       0 b_in_s(3D) | 1 b_out_s(D) | 2 b_in_c(3D) | 3 b_out_c(D)
    #       4 b1(SW)     | 5 b2(D)      | 6-8 ln_g(3,D) | 9-11 ln_b(3,D)
    R_VEC = 3 * D + SW
    N_ROWS = R_VEC + 16

    f32 = jnp.float32

    def rowpad(v):
        v = jnp.asarray(v, f32)
        v = v.reshape(-1, v.shape[-1])
        return jnp.pad(v, ((0, 0), (0, SW - v.shape[-1])))

    w_att_s = jnp.concatenate([params["w_in_s"], params["w_out_s"]], axis=1)  # (D, 4D)
    w_att_c = jnp.concatenate([params["w_in_c"], params["w_out_c"]], axis=1)  # (D, 4D)
    w2p = jnp.pad(params["w2"].astype(f32), ((0, SW - F), (0, SW - D)))       # (SW, SW)

    vec = jnp.concatenate([
        rowpad(params["b_in_s"]), rowpad(params["b_out_s"]),
        rowpad(params["b_in_c"]), rowpad(params["b_out_c"]),
        rowpad(params["b1"]), rowpad(params["b2"]),
        rowpad(params["ln_g"]), rowpad(params["ln_b"]),
    ], axis=0)                                                                # (12, SW)
    vec = jnp.pad(vec, ((0, 16 - vec.shape[0]), (0, 0)))                      # (16, SW)

    slab = jnp.concatenate([rowpad(w_att_s), rowpad(w_att_c),
                            rowpad(params["w1"]), w2p, vec], axis=0)          # (N_ROWS, SW)
    assert slab.shape == (N_ROWS, SW)

    x_in = x[:, None, :].astype(f32)                     # (B, 1, D)
    tgt = params["concept_embeds"].astype(f32)           # (T, D), shared across batch
    go = go_mask.astype(f32)                             # (S, D)

    # Single grid step at small B (prologue-bound); only split for v7x megacore when the
    # per-core batch work can actually hide the per-core prologue.
    n_blocks = 2 if (B % 2 == 0 and B >= 32) else 1
    Bblk = B // n_blocks
    scale = 1.0 / math.sqrt(D)

    def kernel(x_ref, go_ref, tgt_ref, p_ref, out_ref):
        Bb = out_ref.shape[0]

        tgt_v = tgt_ref[...]                              # (T, D)
        go_v = go_ref[...]                                # (S, D)
        xb = x_ref[...]                                   # (Bb, 1, D)
        mem = xb * go_v[None, :, :]                       # (Bb, S, D) masked inputs (VPU)

        # --- unpack parameter slab (aligned row-group loads, cheap value lane slices) ---
        watt_s = p_ref[0:D, :]                            # (D, SW)
        watt_c = p_ref[D:2 * D, :]                        # (D, SW)
        w1 = p_ref[2 * D:3 * D, :]                        # (D, SW)
        w2 = p_ref[3 * D:3 * D + SW, :][:, 0:D]           # (SW, D)
        vecs = p_ref[R_VEC:R_VEC + 16, :]                 # (16, SW)

        b_qkv_s = vecs[0:1, 0:3 * D]
        b_o_s = vecs[1:2, 0:D]
        b_q_c = vecs[2:3, 0:D]
        b_kv_c = vecs[2:3, D:3 * D]
        b_o_c = vecs[3:4, 0:D]
        b1 = vecs[4:5, :]
        b2 = vecs[5:6, 0:D]
        ln_g = vecs[6:9, 0:D]                             # (3, D)
        ln_b = vecs[9:12, 0:D]                            # (3, D)

        def ln(v, i):
            mu = jnp.mean(v, axis=-1, keepdims=True)
            var = jnp.mean(jnp.square(v - mu), axis=-1, keepdims=True)
            return (v - mu) * jax.lax.rsqrt(var + 1e-5) * ln_g[i:i + 1] + ln_b[i:i + 1]

        # --- self-attention block (target identical across batch -> computed once) ---
        qkv = jnp.dot(tgt_v, watt_s[:, 0:3 * D],
                      preferred_element_type=jnp.float32) + b_qkv_s          # (T, 3D) fused
        q, k, v = qkv[:, 0:D], qkv[:, D:2 * D], qkv[:, 2 * D:3 * D]
        s = jnp.einsum("td,sd->ts", q, k, preferred_element_type=jnp.float32) * scale
        o = jnp.dot(_softmax(s), v, preferred_element_type=jnp.float32)
        sa = jnp.dot(o, watt_s[:, 3 * D:4 * D],
                     preferred_element_type=jnp.float32) + b_o_s
        x1 = ln(tgt_v + sa, 0)                                               # (T, D)

        # --- cross-attention block (memory = masked inputs, per batch element) ---
        qc = jnp.dot(x1, watt_c[:, 0:D], preferred_element_type=jnp.float32) + b_q_c
        mem_flat = mem.reshape(Bb * S, D)
        kv = jnp.dot(mem_flat, watt_c[:, D:3 * D],
                     preferred_element_type=jnp.float32) + b_kv_c            # (Bb*S, 2D) fused
        kc = kv[:, 0:D].reshape(Bb, S, D)
        vc = kv[:, D:2 * D].reshape(Bb, S, D)
        # q shared across batch: cheap major-dim broadcast keeps a Mosaic-supported batched dot.
        qb = jnp.broadcast_to(qc[None, :, :], (Bb, T, D))
        sc = jnp.einsum("btd,bsd->bts", qb, kc, preferred_element_type=jnp.float32) * scale
        oc = jnp.einsum("bts,bsd->btd", _softmax(sc), vc,
                        preferred_element_type=jnp.float32)                  # (Bb, T, D)
        ca = jnp.dot(oc.reshape(Bb * T, D), watt_c[:, 3 * D:4 * D],
                     preferred_element_type=jnp.float32) + b_o_c
        x2 = ln(x1[None, :, :] + ca.reshape(Bb, T, D), 1)                    # (Bb, T, D)
        x2f = x2.reshape(Bb * T, D)

        # --- feed-forward block (hidden padded to SW lanes; exact; dropout = identity) ---
        h = jnp.maximum(jnp.dot(x2f, w1, preferred_element_type=jnp.float32) + b1, 0.0)
        f = jnp.dot(h, w2, preferred_element_type=jnp.float32) + b2
        x3 = ln(x2f + f, 2)                                                  # (Bb*T, D)

        out_ref[...] = x3.reshape(Bb, T, D).astype(out_ref.dtype)

    return pl.pallas_call(
        kernel,
        out_shape=jax.ShapeDtypeStruct((B, T, D), jnp.float32),
        grid_spec=pltpu.PrefetchScalarGridSpec(
            num_scalar_prefetch=0,
            grid=(n_blocks,),
            in_specs=[
                pl.BlockSpec((Bblk, 1, D), lambda b: (b, 0, 0)),   # x (memory built in-kernel)
                pl.BlockSpec((S, D), lambda b: (0, 0)),            # go_mask (resident)
                pl.BlockSpec((T, D), lambda b: (0, 0)),            # concept embeddings (resident)
                pl.BlockSpec((N_ROWS, SW), lambda b: (0, 0)),      # packed parameter slab
            ],
            out_specs=pl.BlockSpec((Bblk, T, D), lambda b: (b, 0, 0)),
        ),
        compiler_params=pltpu.CompilerParams(dimension_semantics=("parallel",)),
    )(x_in, go, tgt, slab)


# ---------------------------- pure-JAX reference -------------------------------

def reference_forward(x, params, go_mask, n_decoder_concepts):
    B, D = x.shape
    T = n_decoder_concepts
    mem = x[:, None, :] * go_mask[None, :, :]
    tgt = jnp.broadcast_to(params["concept_embeds"][None], (B, T, D))

    def ln(v, g, b):
        mu = v.mean(-1, keepdims=True)
        var = ((v - mu) ** 2).mean(-1, keepdims=True)
        return (v - mu) / jnp.sqrt(var + 1e-5) * g + b

    def mha(q_in, kv_in, w_in, b_in, w_out, b_out):
        q = q_in @ w_in[:, :D] + b_in[0, :D]
        k = kv_in @ w_in[:, D:2 * D] + b_in[0, D:2 * D]
        v = kv_in @ w_in[:, 2 * D:] + b_in[0, 2 * D:]
        s = jnp.einsum("btd,bsd->bts", q, k) / math.sqrt(D)
        p = jax.nn.softmax(s, axis=-1)
        o = jnp.einsum("bts,bsd->btd", p, v)
        return o @ w_out + b_out[0]

    g, be = params["ln_g"], params["ln_b"]
    h = ln(tgt + mha(tgt, tgt, params["w_in_s"], params["b_in_s"],
                     params["w_out_s"], params["b_out_s"]), g[0], be[0])
    h = ln(h + mha(h, mem, params["w_in_c"], params["b_in_c"],
                   params["w_out_c"], params["b_out_c"]), g[1], be[1])
    ff = jnp.maximum(h @ params["w1"] + params["b1"][0], 0.0) @ params["w2"] + params["b2"][0]
    return ln(h + ff, g[2], be[2])


# --------------------------------- main ----------------------------------------

def init_params(key, D, T, F):
    ks = jax.random.split(key, 12)
    n = lambda k, shape, s=0.1: (s * jax.random.normal(k, shape)).astype(jnp.float32)
    return {
        "concept_embeds": n(ks[0], (T, D), 1.0),
        # attention weights stored as (in, out) = PyTorch W.T, packed [Wq | Wk | Wv]
        "w_in_s": n(ks[1], (D, 3 * D)), "b_in_s": n(ks[2], (1, 3 * D)),
        "w_out_s": n(ks[3], (D, D)),    "b_out_s": n(ks[4], (1, D)),
        "w_in_c": n(ks[5], (D, 3 * D)), "b_in_c": n(ks[6], (1, 3 * D)),
        "w_out_c": n(ks[7], (D, D)),    "b_out_c": n(ks[8], (1, D)),
        "w1": n(ks[9], (D, F)),  "b1": n(ks[10], (1, F)),
        "w2": n(ks[11], (F, D)), "b2": jnp.zeros((1, D), jnp.float32),
        "ln_g": jnp.ones((3, D), jnp.float32),
        "ln_b": jnp.zeros((3, D), jnp.float32),
    }


if __name__ == "__main__":
    B, x_dim, n_decoder_concepts, num_GOs, ffw_dim = 2, 32, 8, 16, 64

    key = jax.random.PRNGKey(0)
    k_x, k_mask, k_p = jax.random.split(key, 3)

    x = jax.random.normal(k_x, (B, x_dim), dtype=jnp.float32)
    go_mask = (jax.random.uniform(k_mask, (num_GOs, x_dim)) > 0.5).astype(jnp.float32)
    params = init_params(k_p, x_dim, n_decoder_concepts, ffw_dim)

    fwd = jax.jit(transformer_decoder_net_forward, static_argnums=(3,))
    out = fwd(x, params, go_mask, n_decoder_concepts)
    out = jax.block_until_ready(out)

    ref = reference_forward(x, params, go_mask, n_decoder_concepts)
    assert out.shape == (B, n_decoder_concepts, x_dim)
    # Slightly relaxed tolerance: softmax denominator uses the EUP approximate reciprocal.
    assert jnp.allclose(out, ref, atol=1e-3, rtol=1e-3), "mismatch vs pure-JAX reference"

    print("KERNEL_OK")
</pallas_src>

<mosaic_0001>
module attributes {stable_mosaic.version = 11 : i64} {
  func.func @kernel(%arg0: i32, %arg1: memref<2x1x32xf32, #tpu.memory_space<vmem>>, %arg2: memref<16x32xf32, #tpu.memory_space<vmem>>, %arg3: memref<8x32xf32, #tpu.memory_space<vmem>>, %arg4: memref<240x128xf32, #tpu.memory_space<vmem>>, %arg5: memref<2x8x32xf32, #tpu.memory_space<vmem>>) attributes {dimension_semantics = [#tpu.dimension_semantics<parallel>], iteration_bounds = array<i64: 1>, scalar_prefetch = 0 : i64, scratch_operands = 0 : i64, tpu.core_type = #tpu.core_type<tc>, window_params = [{transform_indices = @transform_0, window_bounds = array<i64: 2, 1, 32>}, {pipeline_mode = #tpu.pipeline_mode<synchronous>, transform_indices = @transform_1, window_bounds = array<i64: 16, 32>}, {pipeline_mode = #tpu.pipeline_mode<synchronous>, transform_indices = @transform_2, window_bounds = array<i64: 8, 32>}, {pipeline_mode = #tpu.pipeline_mode<synchronous>, transform_indices = @transform_3, window_bounds = array<i64: 240, 128>}, {transform_indices = @transform_4, window_bounds = array<i64: 2, 8, 32>}]} {
    %c0 = arith.constant 0 : index
    %c0_0 = arith.constant 0 : index
    %0 = vector.load %arg3[%c0, %c0_0] : memref<8x32xf32, #tpu.memory_space<vmem>>, vector<8x32xf32>
    %c0_1 = arith.constant 0 : index
    %c0_2 = arith.constant 0 : index
    %1 = vector.load %arg2[%c0_1, %c0_2] : memref<16x32xf32, #tpu.memory_space<vmem>>, vector<16x32xf32>
    %c0_3 = arith.constant 0 : index
    %c0_4 = arith.constant 0 : index
    %c0_5 = arith.constant 0 : index
    %2 = vector.load %arg1[%c0_3, %c0_4, %c0_5] : memref<2x1x32xf32, #tpu.memory_space<vmem>>, vector<2x1x32xf32>
    %3 = vector.shape_cast %1 : vector<16x32xf32> to vector<1x16x32xf32>
    %4 = vector.broadcast %2 : vector<2x1x32xf32> to vector<2x16x32xf32>
    %5 = vector.broadcast %3 : vector<1x16x32xf32> to vector<2x16x32xf32>
    %6 = arith.mulf %4, %5 : vector<2x16x32xf32>
    %c0_6 = arith.constant 0 : index
    %c0_7 = arith.constant 0 : index
    %7 = vector.load %arg4[%c0_6, %c0_7] : memref<240x128xf32, #tpu.memory_space<vmem>>, vector<32x128xf32>
    %c32 = arith.constant 32 : index
    %c0_8 = arith.constant 0 : index
    %8 = vector.load %arg4[%c32, %c0_8] : memref<240x128xf32, #tpu.memory_space<vmem>>, vector<32x128xf32>
    %c64 = arith.constant 64 : index
    %c0_9 = arith.constant 0 : index
    %9 = vector.load %arg4[%c64, %c0_9] : memref<240x128xf32, #tpu.memory_space<vmem>>, vector<32x128xf32>
    %c96 = arith.constant 96 : index
    %c0_10 = arith.constant 0 : index
    %10 = vector.load %arg4[%c96, %c0_10] : memref<240x128xf32, #tpu.memory_space<vmem>>, vector<128x128xf32>
    %11 = vector.extract_strided_slice %10 {offsets = [0, 0], sizes = [128, 32], strides = [1, 1]} : vector<128x128xf32> to vector<128x32xf32>
    %c224 = arith.constant 224 : index
    %c0_11 = arith.constant 0 : index
    %12 = vector.load %arg4[%c224, %c0_11] : memref<240x128xf32, #tpu.memory_space<vmem>>, vector<16x128xf32>
    %13 = vector.extract_strided_slice %12 {offsets = [0, 0], sizes = [1, 96], strides = [1, 1]} : vector<16x128xf32> to vector<1x96xf32>
    %14 = vector.extract_strided_slice %12 {offsets = [1, 0], sizes = [1, 32], strides = [1, 1]} : vector<16x128xf32> to vector<1x32xf32>
    %15 = vector.extract_strided_slice %12 {offsets = [2, 0], sizes = [1, 32], strides = [1, 1]} : vector<16x128xf32> to vector<1x32xf32>
    %16 = vector.extract_strided_slice %12 {offsets = [2, 32], sizes = [1, 64], strides = [1, 1]} : vector<16x128xf32> to vector<1x64xf32>
    %17 = vector.extract_strided_slice %12 {offsets = [3, 0], sizes = [1, 32], strides = [1, 1]} : vector<16x128xf32> to vector<1x32xf32>
    %18 = vector.extract_strided_slice %12 {offsets = [4, 0], sizes = [1, 128], strides = [1, 1]} : vector<16x128xf32> to vector<1x128xf32>
    %19 = vector.extract_strided_slice %12 {offsets = [5, 0], sizes = [1, 32], strides = [1, 1]} : vector<16x128xf32> to vector<1x32xf32>
    %20 = vector.extract_strided_slice %12 {offsets = [6, 0], sizes = [3, 32], strides = [1, 1]} : vector<16x128xf32> to vector<3x32xf32>
    %21 = vector.extract_strided_slice %12 {offsets = [9, 0], sizes = [3, 32], strides = [1, 1]} : vector<16x128xf32> to vector<3x32xf32>
    %22 = vector.extract_strided_slice %7 {offsets = [0, 0], sizes = [32, 96], strides = [1, 1]} : vector<32x128xf32> to vector<32x96xf32>
    %cst = arith.constant dense<0.000000e+00> : vector<8x96xf32>
    %23 = tpu.matmul %0, %22, %cst {dimension_numbers = #tpu.dot_dimension_numbers<[1], [0], [0], [1], [0, 0, 1, 1], [], []>} : vector<8x32xf32>, vector<32x96xf32>, vector<8x96xf32> -> vector<8x96xf32>
    %24 = vector.broadcast %13 : vector<1x96xf32> to vector<8x96xf32>
    %25 = arith.addf %23, %24 : vector<8x96xf32>
    %26 = vector.extract_strided_slice %25 {offsets = [0, 0], sizes = [8, 32], strides = [1, 1]} : vector<8x96xf32> to vector<8x32xf32>
    %27 = vector.extract_strided_slice %25 {offsets = [0, 32], sizes = [8, 32], strides = [1, 1]} : vector<8x96xf32> to vector<8x32xf32>
    %28 = vector.extract_strided_slice %25 {offsets = [0, 64], sizes = [8, 32], strides = [1, 1]} : vector<8x96xf32> to vector<8x32xf32>
    "tpu.trace_start"() <{level = 10 : i32, message = "td,sd->ts"}> : () -> ()
    %cst_12 = arith.constant dense<0.000000e+00> : vector<8x8xf32>
    %29 = tpu.matmul %26, %27, %cst_12 {dimension_numbers = #tpu.dot_dimension_numbers<[1], [1], [0], [0], [0, 0, 1, 0], [], []>} : vector<8x32xf32>, vector<8x32xf32>, vector<8x8xf32> -> vector<8x8xf32>
    "tpu.trace_stop"() : () -> ()
    %cst_13 = arith.constant 0.176776692 : f32
    %30 = vector.broadcast %cst_13 : f32 to vector<8x8xf32>
    %31 = arith.mulf %29, %30 : vector<8x8xf32>
    %cst_14 = arith.constant dense<0xFF800000> : vector<8xf32>
    %32 = vector.multi_reduction <maximumf>, %31, %cst_14 [1] : vector<8x8xf32> to vector<8xf32>
    %33 = vector.shape_cast %32 : vector<8xf32> to vector<8x1xf32>
    %34 = vector.broadcast %33 : vector<8x1xf32> to vector<8x8xf32>
    %35 = arith.subf %31, %34 : vector<8x8xf32>
    %36 = math.exp %35 : vector<8x8xf32>
    %cst_15 = arith.constant dense<0.000000e+00> : vector<8xf32>
    %37 = vector.multi_reduction <add>, %36, %cst_15 [1] : vector<8x8xf32> to vector<8xf32>
    %38 = vector.shape_cast %37 : vector<8xf32> to vector<8x1xf32>
    %39 = tpu.reciprocal %38 {approx = true} : vector<8x1xf32> -> vector<8x1xf32>
    %40 = vector.broadcast %39 : vector<8x1xf32> to vector<8x8xf32>
    %41 = arith.mulf %36, %40 : vector<8x8xf32>
    %cst_16 = arith.constant dense<0.000000e+00> : vector<8x32xf32>
    %42 = tpu.matmul %41, %28, %cst_16 {dimension_numbers = #tpu.dot_dimension_numbers<[1], [0], [0], [1], [0, 0, 1, 1], [], []>} : vector<8x8xf32>, vector<8x32xf32>, vector<8x32xf32> -> vector<8x32xf32>
    %43 = vector.extract_strided_slice %7 {offsets = [0, 96], sizes = [32, 32], strides = [1, 1]} : vector<32x128xf32> to vector<32x32xf32>
    %cst_17 = arith.constant dense<0.000000e+00> : vector<8x32xf32>
    %44 = tpu.matmul %42, %43, %cst_17 {dimension_numbers = #tpu.dot_dimension_numbers<[1], [0], [0], [1], [0, 0, 1, 1], [], []>} : vector<8x32xf32>, vector<32x32xf32>, vector<8x32xf32> -> vector<8x32xf32>
    %45 = vector.broadcast %14 : vector<1x32xf32> to vector<8x32xf32>
    %46 = arith.addf %44, %45 : vector<8x32xf32>
    %47 = arith.addf %0, %46 : vector<8x32xf32>
    %cst_18 = arith.constant dense<0.000000e+00> : vector<8xf32>
    %48 = vector.multi_reduction <add>, %47, %cst_18 [1] : vector<8x32xf32> to vector<8xf32>
    %49 = vector.shape_cast %48 : vector<8xf32> to vector<8x1xf32>
    %cst_19 = arith.constant 3.200000e+01 : f32
    %50 = vector.broadcast %cst_19 : f32 to vector<8x1xf32>
    %51 = arith.divf %49, %50 : vector<8x1xf32>
    %52 = vector.broadcast %51 : vector<8x1xf32> to vector<8x32xf32>
    %53 = arith.subf %47, %52 : vector<8x32xf32>
    %54 = arith.mulf %53, %53 : vector<8x32xf32>
    %cst_20 = arith.constant dense<0.000000e+00> : vector<8xf32>
    %55 = vector.multi_reduction <add>, %54, %cst_20 [1] : vector<8x32xf32> to vector<8xf32>
    %56 = vector.shape_cast %55 : vector<8xf32> to vector<8x1xf32>
    %cst_21 = arith.constant 3.200000e+01 : f32
    %57 = vector.broadcast %cst_21 : f32 to vector<8x1xf32>
    %58 = arith.divf %56, %57 : vector<8x1xf32>
    %59 = vector.broadcast %51 : vector<8x1xf32> to vector<8x32xf32>
    %60 = arith.subf %47, %59 : vector<8x32xf32>
    %cst_22 = arith.constant 9.99999974E-6 : f32
    %61 = vector.broadcast %cst_22 : f32 to vector<8x1xf32>
    %62 = arith.addf %58, %61 : vector<8x1xf32>
    %63 = math.rsqrt %62 : vector<8x1xf32>
    %64 = vector.broadcast %63 : vector<8x1xf32> to vector<8x32xf32>
    %65 = arith.mulf %60, %64 : vector<8x32xf32>
    %66 = vector.extract_strided_slice %20 {offsets = [0, 0], sizes = [1, 32], strides = [1, 1]} : vector<3x32xf32> to vector<1x32xf32>
    %67 = vector.broadcast %66 : vector<1x32xf32> to vector<8x32xf32>
    %68 = arith.mulf %65, %67 : vector<8x32xf32>
    %69 = vector.extract_strided_slice %21 {offsets = [0, 0], sizes = [1, 32], strides = [1, 1]} : vector<3x32xf32> to vector<1x32xf32>
    %70 = vector.broadcast %69 : vector<1x32xf32> to vector<8x32xf32>
    %71 = arith.addf %68, %70 : vector<8x32xf32>
    %72 = vector.extract_strided_slice %8 {offsets = [0, 0], sizes = [32, 32], strides = [1, 1]} : vector<32x128xf32> to vector<32x32xf32>
    %cst_23 = arith.constant dense<0.000000e+00> : vector<8x32xf32>
    %73 = tpu.matmul %71, %72, %cst_23 {dimension_numbers = #tpu.dot_dimension_numbers<[1], [0], [0], [1], [0, 0, 1, 1], [], []>} : vector<8x32xf32>, vector<32x32xf32>, vector<8x32xf32> -> vector<8x32xf32>
    %74 = vector.broadcast %15 : vector<1x32xf32> to vector<8x32xf32>
    %75 = arith.addf %73, %74 : vector<8x32xf32>
    %76 = vector.shape_cast %6 : vector<2x16x32xf32> to vector<32x32xf32>
    %77 = vector.extract_strided_slice %8 {offsets = [0, 32], sizes = [32, 64], strides = [1, 1]} : vector<32x128xf32> to vector<32x64xf32>
    %cst_24 = arith.constant dense<0.000000e+00> : vector<32x64xf32>
    %78 = tpu.matmul %76, %77, %cst_24 {dimension_numbers = #tpu.dot_dimension_numbers<[1], [0], [0], [1], [0, 0, 1, 1], [], []>} : vector<32x32xf32>, vector<32x64xf32>, vector<32x64xf32> -> vector<32x64xf32>
    %79 = vector.broadcast %16 : vector<1x64xf32> to vector<32x64xf32>
    %80 = arith.addf %78, %79 : vector<32x64xf32>
    %81 = vector.extract_strided_slice %80 {offsets = [0, 0], sizes = [32, 32], strides = [1, 1]} : vector<32x64xf32> to vector<32x32xf32>
    %82 = vector.shape_cast %81 : vector<32x32xf32> to vector<2x16x32xf32>
    %83 = vector.extract_strided_slice %80 {offsets = [0, 32], sizes = [32, 32], strides = [1, 1]} : vector<32x64xf32> to vector<32x32xf32>
    %84 = vector.shape_cast %83 : vector<32x32xf32> to vector<2x16x32xf32>
    %85 = vector.shape_cast %75 : vector<8x32xf32> to vector<1x8x32xf32>
    %86 = vector.shape_cast %85 : vector<1x8x32xf32> to vector<1x8x32xf32>
    %87 = vector.broadcast %86 : vector<1x8x32xf32> to vector<2x8x32xf32>
    "tpu.trace_start"() <{level = 10 : i32, message = "btd,bsd->bts"}> : () -> ()
    %cst_25 = arith.constant dense<0.000000e+00> : vector<2x8x16xf32>
    %88 = tpu.matmul %87, %82, %cst_25 {dimension_numbers = #tpu.dot_dimension_numbers<[2], [2], [1], [1], [0, 0, 0, 1, 1, 1], [0], [0]>} : vector<2x8x32xf32>, vector<2x16x32xf32>, vector<2x8x16xf32> -> vector<2x8x16xf32>
    "tpu.trace_stop"() : () -> ()
    %cst_26 = arith.constant 0.176776692 : f32
    %89 = vector.broadcast %cst_26 : f32 to vector<2x8x16xf32>
    %90 = arith.mulf %88, %89 : vector<2x8x16xf32>
    %cst_27 = arith.constant dense<0xFF800000> : vector<2x8xf32>
    %91 = vector.multi_reduction <maximumf>, %90, %cst_27 [2] : vector<2x8x16xf32> to vector<2x8xf32>
    %92 = vector.shape_cast %91 : vector<2x8xf32> to vector<2x8x1xf32>
    %93 = vector.broadcast %92 : vector<2x8x1xf32> to vector<2x8x16xf32>
    %94 = arith.subf %90, %93 : vector<2x8x16xf32>
    %95 = math.exp %94 : vector<2x8x16xf32>
    %cst_28 = arith.constant dense<0.000000e+00> : vector<2x8xf32>
    %96 = vector.multi_reduction <add>, %95, %cst_28 [2] : vector<2x8x16xf32> to vector<2x8xf32>
    %97 = vector.shape_cast %96 : vector<2x8xf32> to vector<2x8x1xf32>
    %98 = tpu.reciprocal %97 {approx = true} : vector<2x8x1xf32> -> vector<2x8x1xf32>
    %99 = vector.broadcast %98 : vector<2x8x1xf32> to vector<2x8x16xf32>
    %100 = arith.mulf %95, %99 : vector<2x8x16xf32>
    "tpu.trace_start"() <{level = 10 : i32, message = "bts,bsd->btd"}> : () -> ()
    %cst_29 = arith.constant dense<0.000000e+00> : vector<2x8x32xf32>
    %101 = tpu.matmul %100, %84, %cst_29 {dimension_numbers = #tpu.dot_dimension_numbers<[2], [1], [1], [2], [0, 0, 0, 1, 1, 2], [0], [0]>} : vector<2x8x16xf32>, vector<2x16x32xf32>, vector<2x8x32xf32> -> vector<2x8x32xf32>
    "tpu.trace_stop"() : () -> ()
    %102 = vector.shape_cast %101 : vector<2x8x32xf32> to vector<16x32xf32>
    %103 = vector.extract_strided_slice %8 {offsets = [0, 96], sizes = [32, 32], strides = [1, 1]} : vector<32x128xf32> to vector<32x32xf32>
    %cst_30 = arith.constant dense<0.000000e+00> : vector<16x32xf32>
    %104 = tpu.matmul %102, %103, %cst_30 {dimension_numbers = #tpu.dot_dimension_numbers<[1], [0], [0], [1], [0, 0, 1, 1], [], []>} : vector<16x32xf32>, vector<32x32xf32>, vector<16x32xf32> -> vector<16x32xf32>
    %105 = vector.broadcast %17 : vector<1x32xf32> to vector<16x32xf32>
    %106 = arith.addf %104, %105 : vector<16x32xf32>
    %107 = vector.shape_cast %71 : vector<8x32xf32> to vector<1x8x32xf32>
    %108 = vector.shape_cast %106 : vector<16x32xf32> to vector<2x8x32xf32>
    %109 = vector.broadcast %107 : vector<1x8x32xf32> to vector<2x8x32xf32>
    %110 = arith.addf %109, %108 : vector<2x8x32xf32>
    %cst_31 = arith.constant dense<0.000000e+00> : vector<2x8xf32>
    %111 = vector.multi_reduction <add>, %110, %cst_31 [2] : vector<2x8x32xf32> to vector<2x8xf32>
    %112 = vector.shape_cast %111 : vector<2x8xf32> to vector<2x8x1xf32>
    %cst_32 = arith.constant 3.200000e+01 : f32
    %113 = vector.broadcast %cst_32 : f32 to vector<2x8x1xf32>
    %114 = arith.divf %112, %113 : vector<2x8x1xf32>
    %115 = vector.broadcast %114 : vector<2x8x1xf32> to vector<2x8x32xf32>
    %116 = arith.subf %110, %115 : vector<2x8x32xf32>
    %117 = arith.mulf %116, %116 : vector<2x8x32xf32>
    %cst_33 = arith.constant dense<0.000000e+00> : vector<2x8xf32>
    %118 = vector.multi_reduction <add>, %117, %cst_33 [2] : vector<2x8x32xf32> to vector<2x8xf32>
    %119 = vector.shape_cast %118 : vector<2x8xf32> to vector<2x8x1xf32>
    %cst_34 = arith.constant 3.200000e+01 : f32
    %120 = vector.broadcast %cst_34 : f32 to vector<2x8x1xf32>
    %121 = arith.divf %119, %120 : vector<2x8x1xf32>
    %122 = vector.broadcast %114 : vector<2x8x1xf32> to vector<2x8x32xf32>
    %123 = arith.subf %110, %122 : vector<2x8x32xf32>
    %cst_35 = arith.constant 9.99999974E-6 : f32
    %124 = vector.broadcast %cst_35 : f32 to vector<2x8x1xf32>
    %125 = arith.addf %121, %124 : vector<2x8x1xf32>
    %126 = math.rsqrt %125 : vector<2x8x1xf32>
    %127 = vector.broadcast %126 : vector<2x8x1xf32> to vector<2x8x32xf32>
    %128 = arith.mulf %123, %127 : vector<2x8x32xf32>
    %129 = vector.extract_strided_slice %20 {offsets = [1, 0], sizes = [1, 32], strides = [1, 1]} : vector<3x32xf32> to vector<1x32xf32>
    %130 = vector.shape_cast %129 : vector<1x32xf32> to vector<1x1x32xf32>
    %131 = vector.broadcast %130 : vector<1x1x32xf32> to vector<2x8x32xf32>
    %132 = arith.mulf %128, %131 : vector<2x8x32xf32>
    %133 = vector.extract_strided_slice %21 {offsets = [1, 0], sizes = [1, 32], strides = [1, 1]} : vector<3x32xf32> to vector<1x32xf32>
    %134 = vector.shape_cast %133 : vector<1x32xf32> to vector<1x1x32xf32>
    %135 = vector.broadcast %134 : vector<1x1x32xf32> to vector<2x8x32xf32>
    %136 = arith.addf %132, %135 : vector<2x8x32xf32>
    %137 = vector.shape_cast %136 : vector<2x8x32xf32> to vector<16x32xf32>
    %cst_36 = arith.constant dense<0.000000e+00> : vector<16x128xf32>
    %138 = tpu.matmul %137, %9, %cst_36 {dimension_numbers = #tpu.dot_dimension_numbers<[1], [0], [0], [1], [0, 0, 1, 1], [], []>} : vector<16x32xf32>, vector<32x128xf32>, vector<16x128xf32> -> vector<16x128xf32>
    %139 = vector.broadcast %18 : vector<1x128xf32> to vector<16x128xf32>
    %140 = arith.addf %138, %139 : vector<16x128xf32>
    %cst_37 = arith.constant 0.000000e+00 : f32
    %141 = vector.broadcast %cst_37 : f32 to vector<16x128xf32>
    %142 = arith.maximumf %140, %141 : vector<16x128xf32>
    %cst_38 = arith.constant dense<0.000000e+00> : vector<16x32xf32>
    %143 = tpu.matmul %142, %11, %cst_38 {dimension_numbers = #tpu.dot_dimension_numbers<[1], [0], [0], [1], [0, 0, 1, 1], [], []>} : vector<16x128xf32>, vector<128x32xf32>, vector<16x32xf32> -> vector<16x32xf32>
    %144 = vector.broadcast %19 : vector<1x32xf32> to vector<16x32xf32>
    %145 = arith.addf %143, %144 : vector<16x32xf32>
    %146 = arith.addf %137, %145 : vector<16x32xf32>
    %cst_39 = arith.constant dense<0.000000e+00> : vector<16xf32>
    %147 = vector.multi_reduction <add>, %146, %cst_39 [1] : vector<16x32xf32> to vector<16xf32>
    %148 = vector.shape_cast %147 : vector<16xf32> to vector<16x1xf32>
    %cst_40 = arith.constant 3.200000e+01 : f32
    %149 = vector.broadcast %cst_40 : f32 to vector<16x1xf32>
    %150 = arith.divf %148, %149 : vector<16x1xf32>
    %151 = vector.broadcast %150 : vector<16x1xf32> to vector<16x32xf32>
    %152 = arith.subf %146, %151 : vector<16x32xf32>
    %153 = arith.mulf %152, %152 : vector<16x32xf32>
    %cst_41 = arith.constant dense<0.000000e+00> : vector<16xf32>
    %154 = vector.multi_reduction <add>, %153, %cst_41 [1] : vector<16x32xf32> to vector<16xf32>
    %155 = vector.shape_cast %154 : vector<16xf32> to vector<16x1xf32>
    %cst_42 = arith.constant 3.200000e+01 : f32
    %156 = vector.broadcast %cst_42 : f32 to vector<16x1xf32>
    %157 = arith.divf %155, %156 : vector<16x1xf32>
    %158 = vector.broadcast %150 : vector<16x1xf32> to vector<16x32xf32>
    %159 = arith.subf %146, %158 : vector<16x32xf32>
    %cst_43 = arith.constant 9.99999974E-6 : f32
    %160 = vector.broadcast %cst_43 : f32 to vector<16x1xf32>
    %161 = arith.addf %157, %160 : vector<16x1xf32>
    %162 = math.rsqrt %161 : vector<16x1xf32>
    %163 = vector.broadcast %162 : vector<16x1xf32> to vector<16x32xf32>
    %164 = arith.mulf %159, %163 : vector<16x32xf32>
    %165 = vector.extract_strided_slice %20 {offsets = [2, 0], sizes = [1, 32], strides = [1, 1]} : vector<3x32xf32> to vector<1x32xf32>
    %166 = vector.broadcast %165 : vector<1x32xf32> to vector<16x32xf32>
    %167 = arith.mulf %164, %166 : vector<16x32xf32>
    %168 = vector.extract_strided_slice %21 {offsets = [2, 0], sizes = [1, 32], strides = [1, 1]} : vector<3x32xf32> to vector<1x32xf32>
    %169 = vector.broadcast %168 : vector<1x32xf32> to vector<16x32xf32>
    %170 = arith.addf %167, %169 : vector<16x32xf32>
    %171 = vector.shape_cast %170 : vector<16x32xf32> to vector<2x8x32xf32>
    %c0_44 = arith.constant 0 : index
    %c0_45 = arith.constant 0 : index
    %c0_46 = arith.constant 0 : index
    %172 = vector.load %arg5[%c0_44, %c0_45, %c0_46] : memref<2x8x32xf32, #tpu.memory_space<vmem>>, vector<2x8x32xf32>
    tpu.vector_store %arg5[%c0_44, %c0_45, %c0_46], %171 {strides = array<i32>} : memref<2x8x32xf32, #tpu.memory_space<vmem>>, vector<2x8x32xf32>,
    return
  }
  func.func @transform_0(%arg0: i32) -> (i32, i32, i32) {
    %c0_i32 = arith.constant 0 : i32
    %c0_i32_0 = arith.constant 0 : i32
    %c0_i32_1 = arith.constant 0 : i32
    return %arg0, %c0_i32, %c0_i32_0 : i32, i32, i32
  }
  func.func @transform_1(%arg0: i32) -> (i32, i32) {
    %c0_i32 = arith.constant 0 : i32
    %c0_i32_0 = arith.constant 0 : i32
    %c0_i32_1 = arith.constant 0 : i32
    return %c0_i32, %c0_i32_0 : i32, i32
  }
  func.func @transform_2(%arg0: i32) -> (i32, i32) {
    %c0_i32 = arith.constant 0 : i32
    %c0_i32_0 = arith.constant 0 : i32
    %c0_i32_1 = arith.constant 0 : i32
    return %c0_i32, %c0_i32_0 : i32, i32
  }
  func.func @transform_3(%arg0: i32) -> (i32, i32) {
    %c0_i32 = arith.constant 0 : i32
    %c0_i32_0 = arith.constant 0 : i32
    %c0_i32_1 = arith.constant 0 : i32
    return %c0_i32, %c0_i32_0 : i32, i32
  }
  func.func @transform_4(%arg0: i32) -> (i32, i32, i32) {
    %c0_i32 = arith.constant 0 : i32
    %c0_i32_0 = arith.constant 0 : i32
    %c0_i32_1 = arith.constant 0 : i32
    return %arg0, %c0_i32, %c0_i32_0 : i32, i32, i32
  }
}

</mosaic_0001>

<bundles_post_ra>
// kernel: transformer_decoder_net_forward.1
= control target key start
LH: loop header
LB: loop body
LE: loop exit
PB: predicated region body
PF: predicated region fallthrough
CT: control target
= control target key end

     0   :  { %s1030_s0 = inlined_call_operand.vmem [shape: f32[2,1,32], index: 0, kind: input, shape index: {}]   ;;  %s1031_s1 = inlined_call_operand.vmem [shape: f32[16,32], index: 1, kind: input, shape index: {}]   ;;  %s1032_s2 = inlined_call_operand.vmem [shape: f32[8,32], index: 2, kind: input, shape index: {}]   ;;  %s1033_s3 = inlined_call_operand.vmem [shape: f32[240,128], index: 3, kind: input, shape index: {}]   ;;  %s1034_s4 = inlined_call_operand.hbm [shape: f32[2,8,32], index: 4, kind: output, shape index: {}]  }
   0x1   :  { %v36_v0 = vld [vmem:[%s1033_s3 + $0x18] sm:$0xff]  ;;  %v35_v1 = vld [vmem:[%s1033_s3 + $0x10] sm:$0xff]  ;;  %v34_v2 = vld [vmem:[%s1033_s3 + $0x8] sm:$0xff] }
   0x2   :  { %80 = vmatpush.msra.mxu0 %v36_v0  ;;  %v33_v3 = vld [vmem:[%s1033_s3] sm:$0xff] }
   0x3   :  { %v707_v4 = vpack.i.bf16 %v33_v3, %v34_v2 }
   0x4   :  { %81 = vmatpush.msra.mxu0 %v35_v1 }
   0x5   :  { %9 = vsyncpa [#allocation3], 0  ;;  %v18_v5 = vld [vmem:[%s1032_s2] sm:$0xff]  ;;  %vm64_vm0 = vcmask 261120   ;;  %s794_s27 = smov 96   ;;  %vm116_vm1 = vcmask 64512   ;;  %v702_v19 = vpack.i.bf16 %v35_v1, %v36_v0 }
   0x6   :  { %82 = vmatpush.msra.mxu0 %v34_v2  ;;  %v845_v6 = vld [vmem:[%s1033_s3 + $0xe0] sm:$0xff]  ;;  %s795_s2 = smov 64   ;;  %s796_s28 = smov 32   ;;  %v39_v36 = vld [vmem:[%s1033_s3 + $0x30] sm:$0xff]  ;;  %v40_v37 = vld [vmem:[%s1033_s3 + $0x38] sm:$0xff]  ;;  %v797_v39 = vmov 32.0  }
   0x7   :  { %v63_v7 = vperm.slane %v845_v6, 0  ;;  %703 = vrot.lane.b32.xlu2 %v702_v19, %s796_s28  ;;  %v154_v31 = vperm.slane %v845_v6, 1  ;;  %v865_v38 = vpack.i.bf16 %v39_v36, %v40_v37  ;;  %v37_v40 = vld [vmem:[%s1033_s3 + $0x20] sm:$0xff]  ;;  %v38_v41 = vld [vmem:[%s1033_s3 + $0x28] sm:$0xff]  ;;  %vm370_vm6 = vcmask 130048   ;;  %s661_s6 = sshll.u32 %s1034_s4, 4  ;;  %s662_s6 = int_to_ptr.hbm [resolvable:$true] %s661_s6 }
   0x8   :  { %83 = vmatpush.msra.mxu0 %v33_v3  ;;  %v875_v42 = vpack.i.bf16 %v37_v40, %v38_v41  ;;  %v742_v59 = vld [vmem:[%s1030_s0] ss:$0 sm:$0xff]  ;;  %v20_v63 = vld [vmem:[%s1031_s1 + $0x8] sm:$0xff]  ;;  %v743_v1 = vld [vmem:[%s1030_s0 + $0x1] ss:$0 sm:$0xff]  ;;  %v228_v3 = vperm.slane %v845_v6, 2 }
   0x9   :  { %673 = vmatmul.msk.f32.vlgmr.msra.gmra.mxu0 %vm64_vm0, %v18_v5  ;;  %v19_v61 = vld [vmem:[%s1031_s1] sm:$0xff]  ;;  %v30_v0 = vmul.f32 %v742_v59, %v20_v63  ;;  %s799_s7 = smov 128   ;;  %s800_s8 = smov 8  }
   0xa   :  { %v29_v62 = vmul.f32 %v742_v59, %v19_v61  ;;  %v31_v2 = vmul.f32 %v743_v1, %v19_v61 }
   0xf   :  { %708 = vrot.lane.b32.xlu2 %v707_v4, %s796_s28  ;;  %v32_v4 = vmul.f32 %v743_v1, %v20_v63 }
  0x61   :  { %v704_v24 = vpop.permute.xlu2 %703 }
  0x62   :  { %v705_v25 = vunpack.i.l.bf16 %v704_v24  ;;  %v706_v26 = vunpack.i.h.bf16 %v704_v24 }
  0x64   :  { %186 = vmatpush.msra.mxu3 %v705_v25 }
  0x66   :  { %187 = vmatpush.msra.mxu3 %v706_v26 }
  0x69   :  { %v709_v27 = vpop.permute.xlu2 %708 }
  0x6a   :  { %v710_v28 = vunpack.i.l.bf16 %v709_v27  ;;  %v711_v29 = vunpack.i.h.bf16 %v709_v27 }
  0x6c   :  { %188 = vmatpush.msra.mxu3 %v710_v28 }
  0x6e   :  { %189 = vmatpush.msra.mxu3 %v711_v29 }
  0x86   :  { %v85_v8 = vpop.f32.mrf.mxu0 }
  0x87   :  { %v86_v9 = vadd.f32 %v85_v8, %v63_v7 }
  0x89   :  { %89 = vrot.lane.b32.xlu0 %v86_v9, %s794_s27 }
  0xfb   :  { %v90_v10 = vpop.permute.xlu0 %89 }
  0xfc   :  { %674 = vmatpush.xpose.msk.msrb.mxu0 %vm64_vm0, %v90_v10 }
  0xff   :  { %675 = vmatmul.msk.f32.vlgmr.msrb.gmra.mxu0 %vm64_vm0, %v86_v9 }
 0x17c   :  { %v112_v11 = vpop.f32.mrf.mxu0 }
 0x17d   :  { %v115_v12 = vmul.f32 0.17677669, %v112_v11 }
 0x17f   :  { %v117_v13 = vsel %vm116_vm1, %v115_v12, -inf }
 0x180   :  { %118 = vmax.xlane.f32.xlu0 %v117_v13 }
 0x194   :  { %713 = vrot.lane.b32.xlu0 %v865_v38, %s794_s27 }
 0x19c   :  { %269 = vrot.lane.b32.xlu0 %v228_v3, %s794_s27 }
 0x1f3   :  { %v119_v14 = vpop.xlane.xlu0 %118 }
 0x1f4   :  { %v120_v15 = vsub.f32 %v115_v12, %v119_v14 }
 0x1f6   :  { %v121_v16 = vmul.f32 1.442695, %v120_v15  ;;  %v905_v15 = vld [vmem:[%s1033_s3 + $0xe8] sm:$0xff] }
 0x1f7   :  { %v226_v19 = vperm.slane %v905_v15, 1 }
 0x1f8   :  { %744 = vpow2.f32 %v121_v16  ;;  %v224_v16 = vperm.slane %v845_v6, 6 }
 0x1fe   :  { %v745_v17 = vpop.eup %744 }
 0x1ff   :  { %v123_v18 = vsel %vm116_vm1, %v745_v17, 0.0 }
 0x200   :  { %124 = vadd.xlane.f32.xlu1 %v123_v18 }
 0x206   :  { %v714_v54 = vpop.permute.xlu0 %713 }
 0x207   :  { %v715_v55 = vunpack.i.l.bf16 %v714_v54  ;;  %v716_v56 = vunpack.i.h.bf16 %v714_v54 }
 0x209   :  { %296 = vmatpush.msra.mxu1 %v715_v55 }
 0x20b   :  { %297 = vmatpush.msra.mxu1 %v716_v56 }
 0x219   :  { %128 = vrot.lane.b32.xlu1 %v86_v9, %s795_s2 }
 0x273   :  { %v125_v20 = vpop.xlane.xlu1 %124 }
 0x274   :  { %746 = vrcp.f32 %v125_v20 }
 0x275   :  { %748 = vrcp.f32 %v797_v39 }
 0x27a   :  { %v747_v21 = vpop.eup %746 }
 0x27b   :  { %v127_v23 = vmul.f32 %v747_v21, %v745_v17  ;;  %v749_v43 = vpop.eup %748 }
 0x27c   :  { %v199_v44 = vmul.f32 32.0, %v749_v43  ;;  %vm203_vm2 = vweird.f32 %v749_v43 }
 0x27e   :  { %v200_v45 = vsub.f32 1.0, %v199_v44 }
 0x280   :  { %v201_v46 = vmul.f32 %v749_v43, %v200_v45 }
 0x282   :  { %v202_v47 = vadd.f32 %v749_v43, %v201_v46 }
 0x284   :  { %v879_v48 = vsel %vm203_vm2, %v749_v43, %v202_v47 }
 0x28b   :  { %v129_v22 = vpop.permute.xlu1 %128 }
 0x28c   :  { %149 = vmatpush.msra.mxu2 %v129_v22 }
 0x28d   :  { %676 = vmatmul.msk.f32.vlgmr.msra.gmra.mxu2 %vm116_vm1, %v127_v23  ;;  %v270_v23 = vpop.permute.xlu0 %269 }
 0x28e   :  { %244 = vmatpush.msrb.mxu2 %v40_v37 }
 0x290   :  { %245 = vmatpush.msrb.mxu2 %v39_v36 }
 0x292   :  { %246 = vmatpush.msrb.mxu2 %v38_v41 }
 0x294   :  { %247 = vmatpush.msrb.mxu2 %v37_v40 }
 0x310   :  { %v151_v30 = vpop.f32.mrf.mxu2 }
 0x311   :  { %677 = vmatmul.msk.f32.vlgmr.msra.gmra.mxu3 %vm64_vm0, %v151_v30 }
 0x394   :  { %v191_v32 = vpop.f32.mrf.mxu3 }
 0x395   :  { %v192_v33 = vadd.f32 %v191_v32, %v154_v31 }
 0x397   :  { %v194_v34 = vadd.f32 %v192_v33, %v18_v5 }
 0x399   :  { %v195_v35 = vsel %vm64_vm0, %v194_v34, 0.0 }
 0x39a   :  { %196 = vadd.xlane.f32.xlu2 %v195_v35 }
 0x3b2   :  { %718 = vrot.lane.b32.xlu2 %v875_v42, %s794_s27 }
 0x40d   :  { %v197_v49 = vpop.xlane.xlu2 %196 }
 0x40e   :  { %v205_v50 = vmul.f32 %v879_v48, %v197_v49 }
 0x410   :  { %v206_v51 = vsub.f32 %v194_v34, %v205_v50 }
 0x412   :  { %v207_v52 = vmul.f32 %v206_v51, %v206_v51 }
 0x414   :  { %v208_v53 = vsel %vm64_vm0, %v207_v52, 0.0 }
 0x415   :  { %209 = vadd.xlane.f32.xlu1 %v208_v53  ;;  %v719_v57 = vpop.permute.xlu2 %718 }
 0x416   :  { %v720_v58 = vunpack.i.l.bf16 %v719_v57  ;;  %v721_v60 = vunpack.i.h.bf16 %v719_v57 }
 0x418   :  { %298 = vmatpush.msra.mxu1 %v720_v58 }
 0x41a   :  { %299 = vmatpush.msra.mxu1 %v721_v60 }
 0x41b   :  { %679 = vmatmul.msk.f32.vlgmr.msra.gmra.mxu1 %vm64_vm0, %v29_v62 }
 0x423   :  { %680 = vmatmul.msk.f32.gmra.mxu1 %vm64_vm0, %v30_v0 }
 0x42b   :  { %681 = vmatmul.msk.f32.gmra.mxu1 %vm64_vm0, %v31_v2 }
 0x433   :  { %682 = vmatmul.msk.f32.gmra.mxu1 %vm64_vm0, %v32_v4 }
 0x488   :  { %v210_v5 = vpop.xlane.xlu1 %209 }
 0x489   :  { %v211_v7 = vmul.f32 %v210_v5, %v879_v48 }
 0x48b   :  { %v212_v8 = vadd.f32 1e-05, %v211_v7 }
 0x48d   :  { %750 = vrsqrt.f32 %v212_v8  ;;  %vm219_vm4 = vweird.f32 %v212_v8 }
 0x493   :  { %v751_v9 = vpop.eup %750 }
 0x494   :  { %v214_v10 = vmul.f32 %v751_v9, %v212_v8  ;;  %vm220_vm3 = vweird.f32 %v751_v9 }
 0x495   :  { %vm221_vm5 = vmor %vm219_vm4, %vm220_vm3 }
 0x496   :  { %v215_v11 = vmul.f32 %v751_v9, %v214_v10 }
 0x498   :  { %v216_v12 = vmul.f32 0.5, %v215_v11  ;;  %v301_v22 = vpop.f32.mrf.mxu1 }
 0x499   :  { %v302_v25 = vadd.f32 %v301_v22, %v270_v23 }
 0x49a   :  { %v217_v13 = vsub.f32 1.5, %v216_v12 }
 0x49c   :  { %v218_v14 = vmul.f32 %v751_v9, %v217_v13 }
 0x49e   :  { %v222_v17 = vsel %vm221_vm5, %v751_v9, %v218_v14  ;;  %v451_v9 = vperm.slane %v845_v6, 3 }
 0x49f   :  { %v223_v18 = vmul.f32 %v222_v17, %v206_v51 }
 0x4a0   :  { %v304_v24 = vpop.f32.mrf.mxu1 }
 0x4a1   :  { %v225_v20 = vmul.f32 %v224_v16, %v223_v18  ;;  %v305_v26 = vadd.f32 %v304_v24, %v270_v23 }
 0x4a3   :  { %v909_v21 = vadd.f32 %v226_v19, %v225_v20  ;;  %v722_v27 = vpack.i.bf16 %v302_v25, %v305_v26  ;;  %683 = vmatpush.xpose.msk.msra.mxu0 %vm64_vm0, %v305_v26 }
 0x4a5   :  { %678 = vmatmul.msk.f32.vlgmr.msrb.gmra.mxu2 %vm64_vm0, %v909_v21 }
 0x4a7   :  { %684 = vmatpush.xpose.msk.msra.mxu0 %vm64_vm0, %v302_v25 }
 0x4a8   :  { %v307_v28 = vpop.f32.mrf.mxu1 }
 0x4a9   :  { %v308_v29 = vadd.f32 %v307_v28, %v270_v23 }
 0x4b0   :  { %v310_v30 = vpop.f32.mrf.mxu1 }
 0x4b1   :  { %v311_v31 = vadd.f32 %v310_v30, %v270_v23  ;;  %v43_v30 = vld [vmem:[%s1033_s3 + $0x50] sm:$0xff] }
 0x4b3   :  { %v727_v32 = vpack.i.bf16 %v308_v29, %v311_v31  ;;  %686 = vmatpush.xpose.msk.msrb.mxu3 %vm64_vm0, %v311_v31  ;;  %v42_v31 = vld [vmem:[%s1033_s3 + $0x48] sm:$0xff] }
 0x4b7   :  { %687 = vmatpush.xpose.msk.msrb.mxu3 %vm64_vm0, %v308_v29  ;;  %v44_v29 = vld [vmem:[%s1033_s3 + $0x58] sm:$0xff] }
 0x528   :  { %v249_v33 = vpop.f32.mrf.mxu2 }
 0x529   :  { %v250_v34 = vadd.f32 %v249_v33, %v228_v3 }
 0x52b   :  { %685 = vmatmul.msk.f32.vlgmr.msra.gmra.mxu0 %vm64_vm0, %v250_v34  ;;  %688 = vmatmul.msk.f32.vlgmr.msrb.gmra.mxu3 %vm64_vm0, %v250_v34 }
 0x5a8   :  { %v339_v35 = vpop.f32.mrf.mxu0 }
 0x5a9   :  { %v368_v36 = vmul.f32 0.17677669, %v339_v35 }
 0x5ab   :  { %v371_v37 = vsel %vm370_vm6, %v368_v36, -inf }
 0x5ac   :  { %372 = vmax.xlane.f32.xlu1 %v371_v37  ;;  %v59_v37 = vld [vmem:[%s1033_s3 + $0xd0] sm:$0xff] }
 0x5ae   :  { %v365_v39 = vpop.f32.mrf.mxu3 }
 0x5af   :  { %v369_v40 = vmul.f32 0.17677669, %v365_v39  ;;  %v58_v39 = vld [vmem:[%s1033_s3 + $0xc8] sm:$0xff] }
 0x5b1   :  { %v374_v41 = vsel %vm370_vm6, %v369_v40, -inf }
 0x5b2   :  { %375 = vmax.xlane.f32.xlu0 %v374_v41 }
 0x5c5   :  { %723 = vrot.lane.b32.xlu1 %v722_v27, %s794_s27 }
 0x5c6   :  { %728 = vrot.lane.b32.xlu0 %v727_v32, %s794_s27  ;;  %v41_v32 = vld [vmem:[%s1033_s3 + $0x40] sm:$0xff] }
 0x5ce   :  { %738 = vrot.lane.b32.xlu0 %v875_v42, %s796_s28 }
 0x61f   :  { %v373_v43 = vpop.xlane.xlu1 %372 }
 0x620   :  { %v377_v44 = vsub.f32 %v368_v36, %v373_v43  ;;  %v60_v36 = vld [vmem:[%s1033_s3 + $0xd8] sm:$0xff]  ;;  %v57_v43 = vld [vmem:[%s1033_s3 + $0xc0] sm:$0xff] }
 0x621   :  { %578 = vmatpush.msrb.mxu1 %v60_v36 }
 0x622   :  { %v379_v45 = vmul.f32 1.442695, %v377_v44 }
 0x623   :  { %579 = vmatpush.msrb.mxu1 %v59_v37 }
 0x624   :  { %752 = vpow2.f32 %v379_v45 }
 0x625   :  { %v376_v46 = vpop.xlane.xlu0 %375  ;;  %580 = vmatpush.msrb.mxu1 %v58_v39 }
 0x626   :  { %v378_v47 = vsub.f32 %v369_v40, %v376_v46  ;;  %v56_v46 = vld [vmem:[%s1033_s3 + $0xb8] sm:$0xff] }
 0x627   :  { %581 = vmatpush.msrb.mxu1 %v57_v43 }
 0x628   :  { %v381_v49 = vmul.f32 1.442695, %v378_v47 }
 0x629   :  { %582 = vmatpush.msrb.mxu1 %v56_v46 }
 0x62a   :  { %v753_v50 = vpop.eup %752  ;;  %754 = vpow2.f32 %v381_v49  ;;  %v55_v49 = vld [vmem:[%s1033_s3 + $0xb0] sm:$0xff] }
 0x62b   :  { %v383_v51 = vsel %vm370_vm6, %v753_v50, 0.0  ;;  %583 = vmatpush.msrb.mxu1 %v55_v49 }
 0x62c   :  { %384 = vadd.xlane.f32.xlu2 %v383_v51  ;;  %v54_v51 = vld [vmem:[%s1033_s3 + $0xa8] sm:$0xff] }
 0x62d   :  { %584 = vmatpush.msrb.mxu1 %v54_v51 }
 0x630   :  { %v755_v52 = vpop.eup %754 }
 0x631   :  { %v386_v53 = vsel %vm370_vm6, %v755_v52, 0.0 }
 0x632   :  { %387 = vadd.xlane.f32.xlu1 %v386_v53  ;;  %v53_v53 = vld [vmem:[%s1033_s3 + $0xa0] sm:$0xff] }
 0x633   :  { %585 = vmatpush.msrb.mxu1 %v53_v53 }
 0x637   :  { %v724_v54 = vpop.permute.xlu1 %723 }
 0x638   :  { %v725_v55 = vunpack.i.l.bf16 %v724_v54  ;;  %v729_v56 = vpop.permute.xlu0 %728  ;;  %v726_v58 = vunpack.i.h.bf16 %v724_v54 }
 0x639   :  { %v730_v57 = vunpack.i.l.bf16 %v729_v56  ;;  %v731_v59 = vunpack.i.h.bf16 %v729_v56  ;;  %v52_v56 = vld [vmem:[%s1033_s3 + $0x98] sm:$0xff] }
 0x63a   :  { %416 = vmatpush.msra.mxu2 %v725_v55  ;;  %586 = vmatpush.msrb.mxu1 %v52_v56 }
 0x63b   :  { %445 = vmatpush.msrb.mxu0 %v730_v57 }
 0x63c   :  { %417 = vmatpush.msra.mxu2 %v726_v58 }
 0x63d   :  { %446 = vmatpush.msrb.mxu0 %v731_v59  ;;  %v539_v59 = vperm.slane %v845_v6, 7 }
 0x63e   :  { %564 = vmatpush.msrb.mxu2 %v44_v29 }
 0x640   :  { %v739_v42 = vpop.permute.xlu0 %738  ;;  %565 = vmatpush.msrb.mxu2 %v43_v30 }
 0x641   :  { %v741_v5 = vunpack.i.h.bf16 %v739_v42 }
 0x642   :  { %566 = vmatpush.msrb.mxu2 %v42_v31 }
 0x644   :  { %733 = vrot.lane.b32.xlu2 %v865_v38, %s796_s28  ;;  %v740_v38 = vunpack.i.l.bf16 %v739_v42  ;;  %567 = vmatpush.msrb.mxu2 %v41_v32 }
 0x69f   :  { %v385_v60 = vpop.xlane.xlu2 %384 }
 0x6a0   :  { %756 = vrcp.f32 %v385_v60  ;;  %v51_v60 = vld [vmem:[%s1033_s3 + $0x90] sm:$0xff] }
 0x6a1   :  { %587 = vmatpush.msrb.mxu1 %v51_v60 }
 0x6a5   :  { %v388_v61 = vpop.xlane.xlu1 %387 }
 0x6a6   :  { %v757_v62 = vpop.eup %756  ;;  %758 = vrcp.f32 %v388_v61 }
 0x6a7   :  { %v391_v63 = vmul.f32 %v757_v62, %v753_v50  ;;  %v734_v2 = vpop.permute.xlu2 %733 }
 0x6a8   :  { %v736_v3 = vunpack.i.h.bf16 %v734_v2  ;;  %v735_v4 = vunpack.i.l.bf16 %v734_v2 }
 0x6a9   :  { %689 = vmatmul.msk.f32.vlgmr.msra.gmra.mxu2 %vm370_vm6, %v391_v63 }
 0x6aa   :  { %482 = vmatpush.msra.mxu3 %v735_v4  ;;  %v49_v4 = vld [vmem:[%s1033_s3 + $0x80] sm:$0xff] }
 0x6ac   :  { %v759_v0 = vpop.eup %758  ;;  %483 = vmatpush.msra.mxu3 %v736_v3 }
 0x6ad   :  { %v392_v1 = vmul.f32 %v759_v0, %v755_v52  ;;  %v542_v0 = vperm.slane %v905_v15, 2 }
 0x6ae   :  { %484 = vmatpush.msra.mxu3 %v740_v38  ;;  %v48_v38 = vld [vmem:[%s1033_s3 + $0x78] sm:$0xff] }
 0x6af   :  { %690 = vmatmul.msk.f32.vlgmr.msrb.gmra.mxu0 %vm370_vm6, %v392_v1  ;;  %v50_v1 = vld [vmem:[%s1033_s3 + $0x88] sm:$0xff] }
 0x6b0   :  { %485 = vmatpush.msra.mxu3 %v741_v5  ;;  %588 = vmatpush.msrb.mxu1 %v50_v1 }
 0x6b2   :  { %589 = vmatpush.msrb.mxu1 %v49_v4 }
 0x6b4   :  { %590 = vmatpush.msrb.mxu1 %v48_v38 }
 0x72c   :  { %v419_v7 = vpop.f32.mrf.mxu2  ;;  %v448_v8 = vpop.f32.mrf.mxu0 }
 0x72d   :  { %691 = vmatmul.msk.f32.vlgmr.msra.gmra.mxu3 %vm64_vm0, %v419_v7 }
 0x735   :  { %692 = vmatmul.msk.f32.gmra.mxu3 %vm64_vm0, %v448_v8 }
 0x7b0   :  { %v487_v10 = vpop.f32.mrf.mxu3 }
 0x7b1   :  { %v488_v11 = vadd.f32 %v487_v10, %v451_v9 }
 0x7b3   :  { %v493_v12 = vadd.f32 %v488_v11, %v909_v21 }
 0x7b5   :  { %v495_v13 = vsel %vm64_vm0, %v493_v12, 0.0 }
 0x7b6   :  { %496 = vadd.xlane.f32.xlu2 %v495_v13  ;;  %v46_v13 = vld [vmem:[%s1033_s3 + $0x68] sm:$0xff] }
 0x7b8   :  { %v490_v14 = vpop.f32.mrf.mxu3 }
 0x7b9   :  { %v491_v16 = vadd.f32 %v490_v14, %v451_v9  ;;  %v45_v14 = vld [vmem:[%s1033_s3 + $0x60] sm:$0xff] }
 0x7bb   :  { %v494_v17 = vadd.f32 %v491_v16, %v909_v21  ;;  %v545_v16 = vperm.slane %v845_v6, 4 }
 0x7bd   :  { %v498_v18 = vsel %vm64_vm0, %v494_v17, 0.0 }
 0x7be   :  { %499 = vadd.xlane.f32.xlu0 %v498_v18 }
 0x829   :  { %v497_v19 = vpop.xlane.xlu2 %496 }
 0x82a   :  { %v501_v20 = vmul.f32 %v497_v19, %v879_v48 }
 0x82c   :  { %v503_v22 = vsub.f32 %v493_v12, %v501_v20  ;;  %v47_v12 = vld [vmem:[%s1033_s3 + $0x70] sm:$0xff]  ;;  %s798_s3 = smov [#allocation2]  }
 0x82d   :  { %591 = vmatpush.msrb.mxu1 %v47_v12  ;;  %s659_s29 = sshll.u32 %s798_s3, 4  ;;  %s660_s29 = int_to_ptr.vmem [resolvable:$true] %s659_s29 }
 0x82e   :  { %v505_v23 = vmul.f32 %v503_v22, %v503_v22 }
 0x82f   :  { %592 = vmatpush.msrb.mxu1 %v46_v13 }
 0x830   :  { %v507_v24 = vsel %vm64_vm0, %v505_v23, 0.0 }
 0x831   :  { %v500_v25 = vpop.xlane.xlu0 %499  ;;  %508 = vadd.xlane.f32.xlu1 %v507_v24  ;;  %593 = vmatpush.msrb.mxu1 %v45_v14  ;;  %v577_v24 = vperm.slane %v845_v6, 5 }
 0x832   :  { %v502_v26 = vmul.f32 %v500_v25, %v879_v48 }
 0x834   :  { %v941_v27 = vsub.f32 %v494_v17, %v502_v26 }
 0x836   :  { %v506_v28 = vmul.f32 %v941_v27, %v941_v27 }
 0x838   :  { %v510_v21 = vsel %vm64_vm0, %v506_v28, 0.0 }
 0x839   :  { %511 = vadd.xlane.f32.xlu1 %v510_v21 }
 0x8a4   :  { %v509_v33 = vpop.xlane.xlu1 %508 }
 0x8a5   :  { %v513_v34 = vmul.f32 %v509_v33, %v879_v48 }
 0x8a7   :  { %v515_v35 = vadd.f32 1e-05, %v513_v34 }
 0x8a9   :  { %760 = vrsqrt.f32 %v515_v35  ;;  %vm523_vm8 = vweird.f32 %v515_v35 }
 0x8ac   :  { %v512_v40 = vpop.xlane.xlu1 %511 }
 0x8ad   :  { %v514_v41 = vmul.f32 %v512_v40, %v879_v48 }
 0x8af   :  { %v761_v44 = vpop.eup %760  ;;  %v516_v45 = vadd.f32 1e-05, %v514_v41 }
 0x8b0   :  { %v518_v47 = vmul.f32 %v761_v44, %v515_v35  ;;  %vm524_vm7 = vweird.f32 %v761_v44 }
 0x8b1   :  { %762 = vrsqrt.f32 %v516_v45  ;;  %vm525_vm9 = vmor %vm523_vm8, %vm524_vm7  ;;  %vm533_vm11 = vweird.f32 %v516_v45 }
 0x8b2   :  { %v519_v50 = vmul.f32 %v761_v44, %v518_v47 }
 0x8b4   :  { %v520_v52 = vmul.f32 0.5, %v519_v50 }
 0x8b6   :  { %v521_v54 = vsub.f32 1.5, %v520_v52 }
 0x8b7   :  { %v763_v55 = vpop.eup %762 }
 0x8b8   :  { %v522_v57 = vmul.f32 %v761_v44, %v521_v54  ;;  %v528_v58 = vmul.f32 %v763_v55, %v516_v45  ;;  %vm534_vm10 = vweird.f32 %v763_v55 }
 0x8b9   :  { %vm535_vm12 = vmor %vm533_vm11, %vm534_vm10 }
 0x8ba   :  { %v526_v61 = vsel %vm525_vm9, %v761_v44, %v522_v57  ;;  %v529_v62 = vmul.f32 %v763_v55, %v528_v58  ;;  %v647_v58 = vperm.slane %v905_v15, 0 }
 0x8bb   :  { %v537_v63 = vmul.f32 %v526_v61, %v503_v22 }
 0x8bc   :  { %v530_v2 = vmul.f32 0.5, %v529_v62 }
 0x8bd   :  { %v540_v3 = vmul.f32 %v539_v59, %v537_v63 }
 0x8be   :  { %v531_v42 = vsub.f32 1.5, %v530_v2 }
 0x8bf   :  { %v543_v5 = vadd.f32 %v542_v0, %v540_v3 }
 0x8c0   :  { %v532_v7 = vmul.f32 %v763_v55, %v531_v42 }
 0x8c1   :  { %693 = vmatmul.msk.f32.vlgmr.msrb.gmra.mxu2 %vm64_vm0, %v543_v5 }
 0x8c2   :  { %v536_v8 = vsel %vm535_vm12, %v763_v55, %v532_v7 }
 0x8c3   :  { %v538_v9 = vmul.f32 %v536_v8, %v941_v27 }
 0x8c5   :  { %v541_v10 = vmul.f32 %v539_v59, %v538_v9 }
 0x8c7   :  { %v544_v11 = vadd.f32 %v542_v0, %v541_v10 }
 0x8c9   :  { %694 = vmatmul.msk.f32.gmra.mxu2 %vm64_vm0, %v544_v11 }
 0x944   :  { %v569_v17 = vpop.f32.mrf.mxu2 }
 0x945   :  { %v570_v18 = vadd.f32 %v569_v17, %v545_v16 }
 0x947   :  { %v575_v19 = vmax.f32 %v570_v18, 0.0 }
 0x949   :  { %594 = vmatmul.f32.vlgmr.msrb.gmra.mxu1 %v575_v19 }
 0x94c   :  { %v572_v20 = vpop.f32.mrf.mxu2 }
 0x94d   :  { %v573_v22 = vadd.f32 %v572_v20, %v545_v16 }
 0x94f   :  { %v576_v23 = vmax.f32 %v573_v22, 0.0 }
 0x951   :  { %597 = vmatmul.f32.gmra.mxu1 %v576_v23 }
 0x9c6   :  { %v595_v25 = vpop.f32.mrf.mxu1 }
 0x9c7   :  { %v596_v26 = vadd.f32 %v595_v25, %v577_v24 }
 0x9c9   :  { %v601_v27 = vadd.f32 %v596_v26, %v543_v5 }
 0x9cb   :  { %v603_v28 = vsel %vm64_vm0, %v601_v27, 0.0 }
 0x9cc   :  { %604 = vadd.xlane.f32.xlu1 %v603_v28 }
 0x9ce   :  { %v598_v21 = vpop.f32.mrf.mxu1 }
 0x9cf   :  { %v599_v29 = vadd.f32 %v598_v21, %v577_v24 }
 0x9d1   :  { %v602_v30 = vadd.f32 %v599_v29, %v544_v11 }
 0x9d3   :  { %v606_v31 = vsel %vm64_vm0, %v602_v30, 0.0 }
 0x9d4   :  { %607 = vadd.xlane.f32.xlu1 %v606_v31 }
 0xa3f   :  { %v605_v32 = vpop.xlane.xlu1 %604 }
 0xa40   :  { %v609_v33 = vmul.f32 %v605_v32, %v879_v48 }
 0xa42   :  { %v611_v34 = vsub.f32 %v601_v27, %v609_v33 }
 0xa44   :  { %v613_v35 = vmul.f32 %v611_v34, %v611_v34 }
 0xa46   :  { %v615_v36 = vsel %vm64_vm0, %v613_v35, 0.0 }
 0xa47   :  { %616 = vadd.xlane.f32.xlu1 %v615_v36  ;;  %v608_v6 = vpop.xlane.xlu1 %607 }
 0xa48   :  { %v610_v37 = vmul.f32 %v608_v6, %v879_v48 }
 0xa4a   :  { %v612_v39 = vsub.f32 %v602_v30, %v610_v37 }
 0xa4c   :  { %v614_v40 = vmul.f32 %v612_v39, %v612_v39 }
 0xa4e   :  { %v618_v41 = vsel %vm64_vm0, %v614_v40, 0.0 }
 0xa4f   :  { %619 = vadd.xlane.f32.xlu2 %v618_v41 }
 0xaba   :  { %v617_v43 = vpop.xlane.xlu1 %616 }
 0xabb   :  { %v621_v44 = vmul.f32 %v617_v43, %v879_v48 }
 0xabd   :  { %v623_v45 = vadd.f32 1e-05, %v621_v44 }
 0xabf   :  { %764 = vrsqrt.f32 %v623_v45  ;;  %vm631_vm14 = vweird.f32 %v623_v45 }
 0xac2   :  { %v620_v46 = vpop.xlane.xlu2 %619 }
 0xac3   :  { %v622_v47 = vmul.f32 %v620_v46, %v879_v48  ;;  %v650_v48 = vperm.slane %v905_v15, 3 }
 0xac5   :  { %v765_v49 = vpop.eup %764  ;;  %v624_v50 = vadd.f32 1e-05, %v622_v47 }
 0xac6   :  { %v626_v51 = vmul.f32 %v765_v49, %v623_v45  ;;  %vm632_vm13 = vweird.f32 %v765_v49 }
 0xac7   :  { %766 = vrsqrt.f32 %v624_v50  ;;  %vm633_vm15 = vmor %vm631_vm14, %vm632_vm13  ;;  %vm641_vm2 = vweird.f32 %v624_v50 }
 0xac8   :  { %v627_v52 = vmul.f32 %v765_v49, %v626_v51 }
 0xaca   :  { %v628_v53 = vmul.f32 0.5, %v627_v52 }
 0xacc   :  { %v629_v54 = vsub.f32 1.5, %v628_v53 }
 0xacd   :  { %v767_v55 = vpop.eup %766 }
 0xace   :  { %v630_v56 = vmul.f32 %v765_v49, %v629_v54  ;;  %v636_v57 = vmul.f32 %v767_v55, %v624_v50  ;;  %vm642_vm1 = vweird.f32 %v767_v55 }
 0xacf   :  { %vm643_vm3 = vmor %vm641_vm2, %vm642_vm1 }
 0xad0   :  { %v634_v59 = vsel %vm633_vm15, %v765_v49, %v630_v56  ;;  %v637_v60 = vmul.f32 %v767_v55, %v636_v57 }
 0xad1   :  { %v645_v61 = vmul.f32 %v634_v59, %v611_v34 }
 0xad2   :  { %v638_v62 = vmul.f32 0.5, %v637_v60 }
 0xad3   :  { %v648_v63 = vmul.f32 %v647_v58, %v645_v61 }
 0xad4   :  { %v639_v0 = vsub.f32 1.5, %v638_v62 }
 0xad5   :  { %v651_v1 = vadd.f32 %v650_v48, %v648_v63 }
 0xad6   :  { %v640_v2 = vmul.f32 %v767_v55, %v639_v0 }
 0xad7   :  { %653 = vst.msk [vmem:[#allocation2] sm:$0xff] %vm64_vm0, %v651_v1 }
 0xad8   :  { %v644_v3 = vsel %vm643_vm3, %v767_v55, %v640_v2 }
 0xad9   :  { %v646_v4 = vmul.f32 %v644_v3, %v612_v39 }
 0xadb   :  { %v649_v42 = vmul.f32 %v647_v58, %v646_v4 }
 0xadd   :  { %v652_v15 = vadd.f32 %v650_v48, %v649_v42 }
 0xadf   :  { %654 = vst.msk [vmem:[#allocation2 + $0x8] sm:$0xff] %vm64_vm0, %v652_v15 }
 0xae0   :  { %667 = dma.vmem_to_hbm [thread:$0]  %s660_s29, 256, %s662_s6, [#allocation3], %s799_s7, %s799_s7, %s800_s8  }
 0xae1   :  { %792 = dma.done.wait [#allocation3], 256  }
 0xae2   :  { %793 = vsyncadd [#allocation3], 4294967040 }
 0xae3   :  { %672 = vsyncpa [#allocation3], 1 }

</bundles_post_ra>
